<compile_context>
chip_gen: v7x
topology: tpu7x:2x2x1
jax: 0.10.0
libtpu: 0.0.40
codegen_flags: <defaults>
</compile_context>

<pallas_src>
import jax
import jax.numpy as jnp
from jax.experimental import pallas as pl
from jax.experimental.pallas import tpu as pltpu


_BLK_SUB = 64    # sublanes per chunk -> (64, 128) f32 blocks = 32 KiB per input
_NCORES = 2      # leading "parallel" grid axis (megacore split on v7x)


def _reg_loss_sparse_kernel(pred_ref, tgt_ref, mask_ref, acc_ref):
    """pred/tgt/mask: (BLK_SUB, 128) f32 chunks; acc: (1, BLK_SUB, 128) resident."""
    @pl.when(pl.program_id(1) == 0)
    def _init():
        acc_ref[...] = jnp.zeros_like(acc_ref)

    prd = pred_ref[...]
    tgt = tgt_ref[...]
    m = mask_ref[...]
    # mask.unsqueeze(2) * isnotnan  ->  single select, NaNs genuinely zeroed.
    loss = jnp.where(jnp.isnan(tgt), jnp.float32(0.0), jnp.abs(prd - tgt)) * m
    acc_ref[...] += loss[None, ...]


def _global_gather_indices(batch_index, ind, n_rows):
    """Global row index of output[batch_index == b][ind[b, k]] via one stable sort."""
    B = ind.shape[0]
    order = jnp.argsort(batch_index, stable=True)                  # rows grouped by batch
    counts = jnp.bincount(batch_index.astype(jnp.int32), length=B)
    offsets = jnp.concatenate(
        [jnp.zeros((1,), counts.dtype), jnp.cumsum(counts)[:-1]])  # exclusive prefix sum
    gather_pos = jnp.clip(offsets[:, None] + ind, 0, n_rows - 1)   # clamp: never OOB
    return order[gather_pos]                                       # (B, M) global indices


def reg_loss_sparse(output, mask, ind, target, batch_index):
    """Pallas implementation of RegLossSparse.forward. Returns (dim,) float32."""
    B, M = mask.shape
    N, dim = output.shape
    R = B * M
    assert dim <= 128, "CenterPoint regression dim expected to be small (<=128)"

    # ---- gather predictions in the wrapper (one bulk take, no per-row DMAs) ----
    flat_inds = _global_gather_indices(batch_index, ind, N).reshape(R)
    pred = jnp.take(output, flat_inds, axis=0).astype(jnp.float32)     # (R, dim)
    tgt = target.reshape(R, dim).astype(jnp.float32)                   # (R, dim)
    mask_f = mask.reshape(R).astype(jnp.float32)                       # (R,)
    num = mask_f.sum()

    # ---- lane-dense packing: pad dim to power of two, pack 128/dim_p rows per vreg row ----
    dim_p = pl.next_power_of_2(dim)
    rows_per_vrow = 128 // dim_p
    pad_c = dim_p - dim

    pred_p = jnp.pad(pred, ((0, 0), (0, pad_c)))
    tgt_p = jnp.pad(tgt, ((0, 0), (0, pad_c)))
    m3 = jnp.pad(jnp.broadcast_to(mask_f[:, None], (R, dim)), ((0, 0), (0, pad_c)))

    rows_per_block = _BLK_SUB * rows_per_vrow
    chunk_rows = _NCORES * rows_per_block
    R_pad = pl.cdiv(R, chunk_rows) * chunk_rows
    pad_r = R_pad - R
    pred_p = jnp.pad(pred_p, ((0, pad_r), (0, 0)))
    tgt_p = jnp.pad(tgt_p, ((0, pad_r), (0, 0)))
    m3 = jnp.pad(m3, ((0, pad_r), (0, 0)))        # padded rows have mask == 0

    n_vrows = R_pad // rows_per_vrow
    pred_v = pred_p.reshape(n_vrows, 128)
    tgt_v = tgt_p.reshape(n_vrows, 128)
    m3_v = m3.reshape(n_vrows, 128)

    n_blocks = n_vrows // _BLK_SUB
    n_half = n_blocks // _NCORES

    in_spec = pl.BlockSpec((_BLK_SUB, 128), lambda c, i: (c * n_half + i, 0))
    grid_spec = pltpu.PrefetchScalarGridSpec(
        num_scalar_prefetch=0,
        grid=(_NCORES, n_half),
        in_specs=[in_spec, in_spec, in_spec],
        out_specs=pl.BlockSpec((1, _BLK_SUB, 128), lambda c, i: (c, 0, 0)),
    )

    acc = pl.pallas_call(
        _reg_loss_sparse_kernel,
        out_shape=jax.ShapeDtypeStruct((_NCORES, _BLK_SUB, 128), jnp.float32),
        grid_spec=grid_spec,
        compiler_params=pltpu.CompilerParams(
            dimension_semantics=("parallel", "arbitrary")),
    )(pred_v, tgt_v, m3_v)

    # ---- fold lane-packed partial sums back to (dim,) and normalize ----
    loss_cols = acc.sum(axis=(0, 1))                                  # (128,)
    loss_dim = loss_cols.reshape(rows_per_vrow, dim_p).sum(axis=0)[:dim]
    return loss_dim / jnp.maximum(num, jnp.float32(1.0))


def reg_loss_sparse_ref(output, mask, ind, target, batch_index):
    """Pure-JAX reference reproducing the PyTorch semantics."""
    B, _ = mask.shape
    preds = []
    for b in range(B):
        rows = output[batch_index == b]
        preds.append(rows[ind[b]])
    pred = jnp.stack(preds)                                           # (B, M, dim)

    num = mask.astype(jnp.float32).sum()
    m3 = mask[..., None].astype(jnp.float32) * (~jnp.isnan(target)).astype(jnp.float32)
    loss = jnp.abs(pred * m3 - target * m3)
    loss = loss.sum(axis=(0, 1)) / jnp.maximum(num, 1.0)
    return loss


if __name__ == "__main__":
    key = jax.random.PRNGKey(0)
    B, M, dim, N = 2, 8, 8, 64

    k1, k2, k3, k4 = jax.random.split(key, 4)
    output = jax.random.normal(k1, (N, dim), dtype=jnp.float32)
    target = jax.random.normal(k2, (B, M, dim), dtype=jnp.float32)
    # interleaved batch assignment (not sorted) to exercise the filter semantics
    batch_index = jnp.arange(N, dtype=jnp.int32) % B                  # 32 rows per batch
    ind = jax.random.randint(k3, (B, M), 0, N // B, dtype=jnp.int32)
    mask = jax.random.bernoulli(k4, 0.7, (B, M))

    out = jax.block_until_ready(reg_loss_sparse(output, mask, ind, target, batch_index))
    ref = reg_loss_sparse_ref(output, mask, ind, target, batch_index)

    assert out.shape == (dim,)
    assert jnp.allclose(out, ref, atol=1e-5, rtol=1e-5), (out, ref)
    print("KERNEL_OK")
</pallas_src>

<mosaic_0001>
module attributes {stable_mosaic.version = 11 : i64} {
  func.func @_reg_loss_sparse_kernel(%arg0: i32, %arg1: i32, %arg2: memref<64x128xf32, #tpu.memory_space<vmem>>, %arg3: memref<64x128xf32, #tpu.memory_space<vmem>>, %arg4: memref<64x128xf32, #tpu.memory_space<vmem>>, %arg5: memref<1x64x128xf32, #tpu.memory_space<vmem>>) attributes {dimension_semantics = [#tpu.dimension_semantics<parallel>, #tpu.dimension_semantics<arbitrary>], iteration_bounds = array<i64: 2, 1>, scalar_prefetch = 0 : i64, scratch_operands = 0 : i64, tpu.core_type = #tpu.core_type<tc>, window_params = [{transform_indices = @transform_0, window_bounds = array<i64: 64, 128>}, {transform_indices = @transform_1, window_bounds = array<i64: 64, 128>}, {transform_indices = @transform_2, window_bounds = array<i64: 64, 128>}, {transform_indices = @transform_3, window_bounds = array<i64: 1, 64, 128>}]} {
    %c0_i32 = arith.constant 0 : i32
    %0 = arith.cmpi eq, %arg1, %c0_i32 : i32
    %1 = arith.extui %0 : i1 to i32
    %c0_i32_0 = arith.constant 0 : i32
    %2 = arith.cmpi ne, %1, %c0_i32_0 : i32
    scf.if %2 {
      %cst_12 = arith.constant 0.000000e+00 : f32
      %16 = vector.broadcast %cst_12 : f32 to vector<1x64x128xf32>
      %c0_13 = arith.constant 0 : index
      %c0_14 = arith.constant 0 : index
      %c0_15 = arith.constant 0 : index
      %17 = vector.load %arg5[%c0_13, %c0_14, %c0_15] : memref<1x64x128xf32, #tpu.memory_space<vmem>>, vector<1x64x128xf32>
      tpu.vector_store %arg5[%c0_13, %c0_14, %c0_15], %16 {strides = array<i32>} : memref<1x64x128xf32, #tpu.memory_space<vmem>>, vector<1x64x128xf32>,
    } else {
    }
    %c0 = arith.constant 0 : index
    %c0_1 = arith.constant 0 : index
    %3 = vector.load %arg2[%c0, %c0_1] : memref<64x128xf32, #tpu.memory_space<vmem>>, vector<64x128xf32>
    %c0_2 = arith.constant 0 : index
    %c0_3 = arith.constant 0 : index
    %4 = vector.load %arg3[%c0_2, %c0_3] : memref<64x128xf32, #tpu.memory_space<vmem>>, vector<64x128xf32>
    %c0_4 = arith.constant 0 : index
    %c0_5 = arith.constant 0 : index
    %5 = vector.load %arg4[%c0_4, %c0_5] : memref<64x128xf32, #tpu.memory_space<vmem>>, vector<64x128xf32>
    %6 = arith.cmpf one, %4, %4 : vector<64x128xf32>
    %7 = arith.subf %3, %4 : vector<64x128xf32>
    %8 = math.absf %7 : vector<64x128xf32>
    %cst = arith.constant 0.000000e+00 : f32
    %9 = vector.broadcast %cst : f32 to vector<64x128xf32>
    %10 = arith.select %6, %9, %8 : vector<64x128xi1>, vector<64x128xf32>
    %11 = arith.mulf %10, %5 : vector<64x128xf32>
    %c0_6 = arith.constant 0 : index
    %c0_7 = arith.constant 0 : index
    %c0_8 = arith.constant 0 : index
    %12 = vector.load %arg5[%c0_6, %c0_7, %c0_8] : memref<1x64x128xf32, #tpu.memory_space<vmem>>, vector<1x64x128xf32>
    %13 = vector.shape_cast %11 : vector<64x128xf32> to vector<1x64x128xf32>
    %14 = arith.addf %12, %13 : vector<1x64x128xf32>
    %c0_9 = arith.constant 0 : index
    %c0_10 = arith.constant 0 : index
    %c0_11 = arith.constant 0 : index
    %15 = vector.load %arg5[%c0_9, %c0_10, %c0_11] : memref<1x64x128xf32, #tpu.memory_space<vmem>>, vector<1x64x128xf32>
    tpu.vector_store %arg5[%c0_9, %c0_10, %c0_11], %14 {strides = array<i32>} : memref<1x64x128xf32, #tpu.memory_space<vmem>>, vector<1x64x128xf32>,
    return
  }
  func.func @transform_0(%arg0: i32, %arg1: i32) -> (i32, i32) {
    %c1_i32 = arith.constant 1 : i32
    %0 = arith.muli %arg0, %c1_i32 : i32
    %1 = arith.addi %0, %arg1 : i32
    %c0_i32 = arith.constant 0 : i32
    %c0_i32_0 = arith.constant 0 : i32
    return %1, %c0_i32 : i32, i32
  }
  func.func @transform_1(%arg0: i32, %arg1: i32) -> (i32, i32) {
    %c1_i32 = arith.constant 1 : i32
    %0 = arith.muli %arg0, %c1_i32 : i32
    %1 = arith.addi %0, %arg1 : i32
    %c0_i32 = arith.constant 0 : i32
    %c0_i32_0 = arith.constant 0 : i32
    return %1, %c0_i32 : i32, i32
  }
  func.func @transform_2(%arg0: i32, %arg1: i32) -> (i32, i32) {
    %c1_i32 = arith.constant 1 : i32
    %0 = arith.muli %arg0, %c1_i32 : i32
    %1 = arith.addi %0, %arg1 : i32
    %c0_i32 = arith.constant 0 : i32
    %c0_i32_0 = arith.constant 0 : i32
    return %1, %c0_i32 : i32, i32
  }
  func.func @transform_3(%arg0: i32, %arg1: i32) -> (i32, i32, i32) {
    %c0_i32 = arith.constant 0 : i32
    %c0_i32_0 = arith.constant 0 : i32
    %c0_i32_1 = arith.constant 0 : i32
    return %arg0, %c0_i32, %c0_i32_0 : i32, i32, i32
  }
}

</mosaic_0001>

<bundles_post_ra>
// kernel: tpu_custom_call.1
= control target key start
LH: loop header
LB: loop body
LE: loop exit
PB: predicated region body
PF: predicated region fallthrough
CT: control target
= control target key end

     0   :  { %s1162_s0 = inlined_call_operand.hbm [shape: f32[128,128], index: 0, kind: input, shape index: {}]   ;;  %s1163_s1 = inlined_call_operand.hbm [shape: f32[128,128], index: 1, kind: input, shape index: {}]   ;;  %s1164_s2 = inlined_call_operand.hbm [shape: f32[128,128], index: 2, kind: input, shape index: {}]   ;;  %s1165_s3 = inlined_call_operand.hbm [shape: f32[2,64,128], index: 3, kind: output, shape index: {}]  }
   0x1   :  { %1175 = sst [smem:[#allocation15_spill]] %s1163_s1 }
   0x2   :  { %8 = vsyncpa [#allocation3], 0 }
   0x3   :  { %10 = vsyncpa [#allocation3 + $0x1], 0 }
   0x4   :  { %11 = vsyncpa [#allocation6], 0 }
   0x5   :  { %13 = vsyncpa [#allocation6 + $0x1], 0 }
   0x6   :  { %14 = vsyncpa [#allocation4], 0 }
   0x7   :  { %16 = vsyncpa [#allocation4 + $0x1], 0  ;;  %s844_s12 = smov 0   ;;  %s846_s13 = smov 0  }
   0x8   :  { %s848_s14 = smov 0   ;;  %s850_s15 = smov 0  }
   0x9   :  { %s852_s16 = smov 0   ;;  %s854_s17 = smov 0  }
   0xa LB: > { %1176 = sst [smem:[#allocation12_spill]] %s810_s16  ;;  %s875_s18 = sadd.s32 4294967295, %s814_s17   ;;  %s814_s17 = sphi %s854_s17, %s22_s17   ;;  %s810_s16 = sphi %s852_s16, %s1199_s16   ;;  %s806_s15 = sphi %s850_s15, %s1198_s15   ;;  %s802_s14 = sphi %s848_s14, %s1202_s14   ;;  %s798_s13 = sphi %s846_s13, %s1201_s13   ;;  %s794_s12 = sphi %s844_s12, %s1200_s12  }
   0xb   : > { %s535_s19 = sadd.s32 4294967294, %s814_s17   ;;  %s34_s20 = sadd.s32 1, %s810_s16 }
   0xc   : > { %s43_s21 = sadd.s32 1, %s802_s14  ;;  %p36_p0 = scmp.ge.s32.totalorder %s34_s20, 2 }
   0xd   : > { %p50_p1 = scmp.ne.s32.totalorder %s802_s14, %s798_s13  ;;  %p51_p2 = scmp.eq.s32.totalorder %s814_s17, 0 }
   0xe   : > { %p56_p3 = scmp.ne.s32.totalorder %s798_s13, %s794_s12  ;;  %s1204_s20 = smov (%p36_p0, %s34_s20), 0 }
   0xf   : > { %1177 = sst [smem:[#allocation13_spill]] %s1204_s20  ;;  %p887_p4 = por %p51_p2, %p50_p1 }
  0x10   : > { %p57_p5 = scmp.eq.s32.totalorder %s875_s18, 0  ;;  %s40_s23 = ssub.s32 %s810_s16, %s1204_s20 }
  0x11   : > { %p136_p6 = scmp.eq.s32.totalorder %s875_s18, 1  ;;  %p41_p7 = scmp.eq.s32.totalorder %s40_s23, 0 }
  0x12   : > { %p895_p8 = por %p57_p5, %p56_p3  ;;  %p142_p10 = scmp.eq.s32.totalorder %s535_s19, 1 }
  0x13   : > { %p899_p9 = por %p136_p6, %p50_p1  ;;  %p583_p13 = scmp.lt.s32.totalorder %s814_s17, 2 }
  0x14   : > { %s1179_s24 = scalar_select %p895_p8, 1, 0 }
  0x15   : > { %s1180_s25 = scalar_select %p899_p9, 1, 0 }
  0x16   : > { %s904_s26 = scalar_select %p41_p7, %s802_s14, %s43_s21  }
  0x17   : > { %p906_p11 = por %p142_p10, %p56_p3  ;;  %s1168_s28 = sand.u32 1, %s802_s14  }
  0x18   : > { %1181 = sst [smem:[#allocation14_spill]] %s904_s26  ;;  %s915_s29 = sshll.u32 %s1168_s28, 6 }
  0x19   : > { %s1182_s27 = scalar_select %p906_p11, 1, 0 }
  0x1a   : > { %s918_s30 = sshll.u32 %s810_s16, 10  ;;  %p922_p0 = pnand %p583_p13, %p887_p4 }
  0x1b   : > { %s184_s5 = sand.u32 1, %s814_s17   ;;  %s1184_s1 = sld [smem:[#allocation15_spill]] }
  0x1c   : > { %s188_s9 = scalar_lea.vmem [#allocation5], %s915_s29  ;;  %s938_s11 = scalar_lea.sflag [#allocation6], %s184_s5 }
  0x1d   : > { %s196_s10 = sshll.u32 %s188_s9, 4  ;;  %p944_p4 = pneg %p922_p0  ;;  %s935_s10 = int_to_ptr.vmem [resolvable:$true] %s196_s10 }
  0x21   : > { %s931_s8 = scalar_lea.hbm %s1184_s1, %s918_s30  ;;  %s643_s6 = scalar_lea.hbm %s1184_s1, 2048 }
  0x22   : > { %s638_s19 = scalar_lea.hbm %s931_s8, 1024  ;;  %p644_p7 = scmp.lt.u32.totalorder %s931_s8, %s1184_s1 }
  0x23   : > { %p639_p3 = scmp.ne.s32.totalorder %s931_s8, %s638_s19  ;;  %p645_p10 = scmp.lt.u32.totalorder %s643_s6, %s638_s19 }
  0x24   : > { %p647_p12 = scmp.lt.u32.totalorder %s638_s19, %s931_s8 }
  0x25   : > { %p641_p5 = pnand %p944_p4, %p639_p3  ;;  %p646_p13 = por %p645_p10, %p644_p7 }
  0x27   : > { %p642_p6 = pneg %p641_p5  ;;  %p648_p1 = por %p647_p12, %p646_p13 }
  0x29   : > { %p649_p2 = pnand %p648_p1, %p642_p6 }
  0x2b   : > { %652 = shalt.err (!%p649_p2)
}
  0x2c   : > { %s653_s5 = scalar_lea.vmem %s935_s10, 1024  ;;  %s816_s22 = smov [#allocation5]  }
  0x2d   : > { %p654_p3 = scmp.ne.s32.totalorder %s935_s10, %s653_s5  ;;  %s658_s23 = sshll.u32 %s816_s22, 4  ;;  %s659_s23 = int_to_ptr.vmem [resolvable:$false] %s658_s23 }
  0x2e   : > { %s660_s7 = scalar_lea.vmem %s659_s23, 2048  ;;  %p661_p9 = scmp.lt.s32.totalorder %s935_s10, %s659_s23 }
  0x2f   : > { %p656_p5 = pnand %p654_p3, %p944_p4  ;;  %p662_p8 = scmp.lt.s32.totalorder %s660_s7, %s653_s5 }
  0x31   : > { %p657_p11 = pneg %p656_p5  ;;  %p663_p7 = por %p662_p8, %p661_p9 }
  0x33   : > { %p664_p10 = pnand %p663_p7, %p657_p11 }
  0x35   : > { %667 = shalt.err (!%p664_p10)
}
  0x36   : > { %s1169_s19 = smov 128   ;;  %s1171_s6 = smov 8  }
  0x37   : > { %575 = dma.hbm_to_vmem [thread:$0]  (!%p922_p0), %s931_s8, 1024, %s935_s10, %s938_s11, %s1169_s19, %s1169_s19, %s1171_s6  }
  0x38   : > { %p1186_p8 = scmp.lt.s32.totalorder %s814_s17, 3  ;;  %p1187_p9 = scmp.ge.s32.totalorder %s814_s17, 1 }
  0x39   : > { %s983_s23 = scalar_lea.hbm %s1162_s0, %s918_s30  ;;  %s166_s7 = scalar_lea.vmem [#allocation2], %s915_s29 }
  0x3a   : > { %p975_p11 = pnand %p1187_p9, %p1186_p8  ;;  %s174_s28 = sshll.u32 %s166_s7, 4  ;;  %s986_s28 = int_to_ptr.vmem [resolvable:$true] %s174_s28 }
  0x3b   : > { %s992_s19 = scalar_lea.hbm %s1164_s2, %s918_s30  ;;  %s1189_s6 = sand.u32 1, %s802_s14  }
  0x3c   : > { %s1188_s9 = scalar_select %p975_p11, 1, 0 }
  0x3d   : > { %s996_s1 = scalar_lea.sflag [#allocation3], %s1189_s6  ;;  %s668_s20 = scalar_lea.hbm %s983_s23, 1024 }
  0x3e   : > { %p669_p12 = scmp.ne.s32.totalorder %s983_s23, %s668_s20  ;;  %s673_s16 = scalar_lea.hbm %s1162_s0, 2048 }
  0x3f   : > { %p674_p6 = scmp.lt.u32.totalorder %s983_s23, %s1162_s0  ;;  %p675_p13 = scmp.lt.u32.totalorder %s673_s16, %s668_s20 }
  0x40   : > { %p671_p1 = pnand %p669_p12, %p944_p4  ;;  %p677_p5 = scmp.lt.u32.totalorder %s668_s20, %s983_s23 }
  0x41   : > { %p676_p3 = por %p675_p13, %p674_p6 }
  0x42   : > { %p672_p2 = pneg %p671_p1 }
  0x43   : > { %p678_p7 = por %p677_p5, %p676_p3 }
  0x45   : > { %p679_p10 = pnand %p678_p7, %p672_p2 }
  0x47   : > { %682 = shalt.err (!%p679_p10)
}
  0x48   : > { %s683_s30 = scalar_lea.vmem %s986_s28, 1024  ;;  %s819_s6 = smov [#allocation2]  }
  0x49   : > { %p684_p8 = scmp.ne.s32.totalorder %s986_s28, %s683_s30  ;;  %s688_s8 = sshll.u32 %s819_s6, 4  ;;  %s689_s8 = int_to_ptr.vmem [resolvable:$false] %s688_s8 }
  0x4a   : > { %s690_s26 = scalar_lea.vmem %s689_s8, 2048  ;;  %p691_p1 = scmp.lt.s32.totalorder %s986_s28, %s689_s8 }
  0x4b   : > { %p686_p9 = pnand %p684_p8, %p944_p4  ;;  %p692_p11 = scmp.lt.s32.totalorder %s690_s26, %s683_s30 }
  0x4d   : > { %p687_p12 = pneg %p686_p9  ;;  %p693_p6 = por %p692_p11, %p691_p1 }
  0x4f   : > { %p694_p13 = pnand %p693_p6, %p687_p12 }
  0x51   : > { %697 = shalt.err (!%p694_p13)
}
  0x52   : > { %s1190_s16 = smov 8   ;;  %s1191_s20 = smov 128  }
  0x53   : > { %572 = dma.hbm_to_vmem [thread:$0]  (!%p922_p0), %s983_s23, 1024, %s986_s28, %s996_s1, %s1191_s20, %s1191_s20, %s1190_s16  }
  0x54   : > { %s210_s10 = scalar_lea.vmem [#allocation7], %s915_s29  ;;  %s698_s22 = scalar_lea.hbm %s992_s19, 1024 }
  0x55   : > { %s218_s5 = sshll.u32 %s210_s10, 4  ;;  %p699_p11 = scmp.ne.s32.totalorder %s992_s19, %s698_s22  ;;  %s1024_s5 = int_to_ptr.vmem [resolvable:$true] %s218_s5 }
  0x56   : > { %s703_s6 = scalar_lea.hbm %s1164_s2, 2048  ;;  %p704_p5 = scmp.lt.u32.totalorder %s992_s19, %s1164_s2 }
  0x57   : > { %p701_p2 = pnand %p699_p11, %p944_p4  ;;  %p705_p7 = scmp.lt.u32.totalorder %s703_s6, %s698_s22 }
  0x58   : > { %p707_p8 = scmp.lt.u32.totalorder %s698_s22, %s992_s19 }
  0x59   : > { %p702_p3 = pneg %p701_p2  ;;  %p706_p10 = por %p705_p7, %p704_p5 }
  0x5b   : > { %p708_p9 = por %p707_p8, %p706_p10 }
  0x5d   : > { %p709_p12 = pnand %p708_p9, %p702_p3 }
  0x5f   : > { %712 = shalt.err (!%p709_p12)
}
  0x60   : > { %s713_s1 = scalar_lea.vmem %s1024_s5, 1024  ;;  %s820_s28 = smov [#allocation7]  }
  0x61   : > { %p714_p1 = scmp.ne.s32.totalorder %s1024_s5, %s713_s1  ;;  %s718_s29 = sshll.u32 %s820_s28, 4  ;;  %s719_s29 = int_to_ptr.vmem [resolvable:$false] %s718_s29 }
  0x62   : > { %s720_s23 = scalar_lea.vmem %s719_s29, 2048  ;;  %p721_p11 = scmp.lt.s32.totalorder %s1024_s5, %s719_s29 }
  0x63   : > { %p716_p6 = pnand %p714_p1, %p944_p4  ;;  %p722_p2 = scmp.lt.s32.totalorder %s720_s23, %s713_s1 }
  0x65   : > { %p717_p13 = pneg %p716_p6  ;;  %p723_p5 = por %p722_p2, %p721_p11 }
  0x67   : > { %p724_p7 = pnand %p723_p5, %p717_p13 }
  0x69   : > { %727 = shalt.err (!%p724_p7)
}
  0x6a   : > { %578 = dma.hbm_to_vmem [thread:$0]  (!%p922_p0), %s992_s19, 1024, %s1024_s5, %s938_s11, %s1191_s20, %s1191_s20, %s1190_s16  }
  0x6b   : > { %p1192_p4 = scmp.ne.s32.totalorder %s1188_s9, 0 }
  0x6c   : > { %s1054_s21 = sand.u32 (!%p1192_p4), 1, %s798_s13   ;;  %p1193_p3 = scmp.ne.s32.totalorder (!%p1192_p4), %s1179_s24, 0 }
  0x6d   : > { %230 = sbr.rel (%p1192_p4) target bundleno = 152 (0x98), region = 32  ;;  %s1057_s10 = sshll.u32 (!%p1192_p4), %s1054_s21, 6 }
  0x6e   : > { %s233_s4 = scalar_lea.sflag (!%p1192_p4), [#allocation3], %s1054_s21  ;;  %s1061_s22 = scalar_lea.vmem (!%p1192_p4), [#allocation2], %s1057_s10 }
  0x74   : > { %781 = dma.done.wait (%p1193_p3), %s233_s4, 1024  }
  0x75   : > { %783 = vsyncadd (%p1193_p3), %s233_s4, 4294966272  ;;  %s241_s11 = sand.u32 1, %s875_s18   ;;  %s1069_s9 = scalar_lea.vmem [#allocation5], %s1057_s10 }
  0x76   : > { %s242_s19 = scalar_lea.sflag [#allocation6], %s241_s11 }
  0x77   : > { %785 = dma.done.wait (%p1193_p3), %s242_s19, 2048  }
  0x78   : > { %787 = vsyncadd (%p1193_p3), %s242_s19, 4294965248  ;;  %v305_v0 = vld [vmem:[%s1061_s22] sm:$0xff]  ;;  %v306_v3 = vld [vmem:[%s1061_s22 + $0x8] sm:$0xff]  ;;  %s1082_s18 = scalar_lea.vmem [#allocation7], %s1057_s10  ;;  %s286_s24 = scalar_lea.vmem [#allocation8], %s1057_s10 }
  0x79   : > { %v313_v1 = vld [vmem:[%s1069_s9] sm:$0xff]  ;;  %v314_v4 = vld [vmem:[%s1069_s9 + $0x8] sm:$0xff]  ;;  %v307_v6 = vld [vmem:[%s1061_s22 + $0x10] sm:$0xff]  ;;  %s560_s16 = sshll.u32 %s806_s15, 10  ;;  %s407_s20 = sshll.u32 %s286_s24, 4  ;;  %s1113_s20 = int_to_ptr.vmem [resolvable:$true] %s407_s20 }
  0x7a   : > { %v337_v2 = vsub.f32 %v305_v0, %v313_v1  ;;  %vm329_vm0 = vcmp.ne.f32.partialorder %v313_v1, %v313_v1  ;;  %v338_v5 = vsub.f32 %v306_v3, %v314_v4  ;;  %v315_v7 = vld [vmem:[%s1069_s9 + $0x10] sm:$0xff]  ;;  %v321_v8 = vld [vmem:[%s1082_s18] sm:$0xff]  ;;  %vm330_vm1 = vcmp.ne.f32.partialorder %v314_v4, %v314_v4  ;;  %v308_v11 = vld [vmem:[%s1061_s22 + $0x18] sm:$0xff]  ;;  %s1111_s30 = scalar_lea.hbm %s1165_s3, %s560_s16  ;;  %s394_s6 = scalar_lea.sflag [#allocation4], %s1054_s21 }
  0x7b   : > { %v339_v10 = vsub.f32 %v307_v6, %v315_v7  ;;  %v316_v12 = vld [vmem:[%s1069_s9 + $0x18] sm:$0xff]  ;;  %v322_v13 = vld [vmem:[%s1082_s18 + $0x8] sm:$0xff]  ;;  %vm331_vm2 = vcmp.ne.f32.partialorder %v315_v7, %v315_v7  ;;  %v309_v16 = vld [vmem:[%s1061_s22 + $0x20] sm:$0xff]  ;;  %s728_s8 = scalar_lea.vmem %s1113_s20, 1024  ;;  %p1194_p10 = scmp.ne.s32.totalorder %s1180_s25, 0 }
  0x7c   : > { %v345_v9 = vand.u32 2147483647, %v337_v2  ;;  %v346_v14 = vand.u32 2147483647, %v338_v5  ;;  %v340_v15 = vsub.f32 %v308_v11, %v316_v12  ;;  %v317_v17 = vld [vmem:[%s1069_s9 + $0x20] sm:$0xff]  ;;  %v323_v19 = vld [vmem:[%s1082_s18 + $0x10] sm:$0xff]  ;;  %vm332_vm3 = vcmp.ne.f32.partialorder %v316_v12, %v316_v12  ;;  %p729_p0 = scmp.ne.s32.totalorder %s1113_s20, %s728_s8 }
  0x7d   : > { %v347_v20 = vand.u32 2147483647, %v339_v10  ;;  %v341_v21 = vsub.f32 %v309_v16, %v317_v17  ;;  %v310_v22 = vld [vmem:[%s1061_s22 + $0x28] sm:$0xff]  ;;  %v324_v26 = vld [vmem:[%s1082_s18 + $0x18] sm:$0xff]  ;;  %vm333_vm4 = vcmp.ne.f32.partialorder %v317_v17, %v317_v17  ;;  %v325_v30 = vld [vmem:[%s1082_s18 + $0x20] sm:$0xff]  ;;  %s821_s15 = smov [#allocation8]  }
  0x7e   : > { %v353_v18 = vsel %vm329_vm0, 0.0, %v345_v9  ;;  %v318_v23 = vld [vmem:[%s1069_s9 + $0x28] sm:$0xff]  ;;  %v354_v25 = vsel %vm330_vm1, 0.0, %v346_v14  ;;  %v348_v27 = vand.u32 2147483647, %v340_v15  ;;  %v311_v33 = vld [vmem:[%s1061_s22 + $0x30] sm:$0xff]  ;;  %p730_p8 = pnand %p729_p0, %p1194_p10 }
  0x7f   : > { %v361_v24 = vmul.f32 %v353_v18, %v321_v8  ;;  %v362_v28 = vmul.f32 %v354_v25, %v322_v13  ;;  %v355_v29 = vsel %vm331_vm2, 0.0, %v347_v20  ;;  %v349_v31 = vand.u32 2147483647, %v341_v21  ;;  %v319_v34 = vld [vmem:[%s1069_s9 + $0x30] sm:$0xff]  ;;  %v312_v37 = vld [vmem:[%s1061_s22 + $0x38] sm:$0xff]  ;;  %v326_v41 = vld [vmem:[%s1082_s18 + $0x28] sm:$0xff] }
  0x80   : > { %v342_v32 = vsub.f32 %v310_v22, %v318_v23  ;;  %v363_v35 = vmul.f32 %v355_v29, %v323_v19  ;;  %v356_v36 = vsel %vm332_vm3, 0.0, %v348_v27  ;;  %vm334_vm5 = vcmp.ne.f32.partialorder %v318_v23, %v318_v23  ;;  %v320_v38 = vld [vmem:[%s1069_s9 + $0x38] sm:$0xff]  ;;  %v327_v48 = vld [vmem:[%s1082_s18 + $0x30] sm:$0xff]  ;;  %p731_p9 = pneg %p730_p8  ;;  %s732_s26 = sshll.u32 %s821_s15, 4  ;;  %s733_s26 = int_to_ptr.vmem [resolvable:$false] %s732_s26 }
  0x81   : > { %v364_v39 = vmul.f32 %v356_v36, %v324_v26  ;;  %v357_v40 = vsel %vm333_vm4, 0.0, %v349_v31  ;;  %385 = vst [vmem:[%s286_s24] sm:$0xff] %v361_v24  ;;  %v343_v44 = vsub.f32 %v311_v33, %v319_v34  ;;  %386 = vst [vmem:[%s286_s24 + $0x8] sm:$0xff] %v362_v28  ;;  %vm335_vm6 = vcmp.ne.f32.partialorder %v319_v34, %v319_v34  ;;  %v328_v50 = vld [vmem:[%s1082_s18 + $0x38] sm:$0xff]  ;;  %s734_s1 = scalar_lea.vmem %s733_s26, 2048  ;;  %p735_p12 = scmp.lt.s32.totalorder %s1113_s20, %s733_s26 }
  0x82   : > { %v350_v42 = vand.u32 2147483647, %v342_v32  ;;  %v365_v43 = vmul.f32 %v357_v40, %v325_v30  ;;  %v344_v46 = vsub.f32 %v312_v37, %v320_v38  ;;  %387 = vst [vmem:[%s286_s24 + $0x10] sm:$0xff] %v363_v35  ;;  %vm336_vm7 = vcmp.ne.f32.partialorder %v320_v38, %v320_v38  ;;  %p736_p1 = scmp.lt.s32.totalorder %s734_s1, %s728_s8 }
  0x83   : > { %v351_v49 = vand.u32 2147483647, %v343_v44  ;;  %388 = vst [vmem:[%s286_s24 + $0x18] sm:$0xff] %v364_v39 }
  0x84   : > { %v358_v45 = vsel %vm334_vm5, 0.0, %v350_v42  ;;  %v352_v51 = vand.u32 2147483647, %v344_v46  ;;  %389 = vst [vmem:[%s286_s24 + $0x20] sm:$0xff] %v365_v43  ;;  %p737_p6 = por %p736_p1, %p735_p12 }
  0x85   : > { %v366_v47 = vmul.f32 %v358_v45, %v326_v41  ;;  %v359_v52 = vsel %vm335_vm6, 0.0, %v351_v49 }
  0x86   : > { %v367_v53 = vmul.f32 %v359_v52, %v327_v48  ;;  %v360_v54 = vsel %vm336_vm7, 0.0, %v352_v51  ;;  %p738_p13 = pnand %p737_p6, %p731_p9 }
  0x87   : > { %390 = vst [vmem:[%s286_s24 + $0x28] sm:$0xff] %v366_v47  ;;  %v368_v55 = vmul.f32 %v360_v54, %v328_v50 }
  0x88   : > { %391 = vst [vmem:[%s286_s24 + $0x30] sm:$0xff] %v367_v53 }
  0x89   : > { %392 = vst [vmem:[%s286_s24 + $0x38] sm:$0xff] %v368_v55 }
  0x8a   : > { %741 = shalt.err (!%p738_p13)
}
  0x8b   : > { %s742_s28 = scalar_lea.hbm %s1111_s30, 1024  ;;  %s746_s10 = scalar_lea.hbm %s1165_s3, 2048 }
  0x8c   : > { %p743_p11 = scmp.ne.s32.totalorder %s1111_s30, %s742_s28  ;;  %p747_p7 = scmp.lt.u32.totalorder %s1111_s30, %s1165_s3 }
  0x8d   : > { %p748_p4 = scmp.lt.u32.totalorder %s746_s10, %s742_s28  ;;  %p750_p0 = scmp.lt.u32.totalorder %s742_s28, %s1111_s30 }
  0x8e   : > { %p744_p2 = pnand %p743_p11, %p1194_p10 }
  0x8f   : > { %p749_p3 = por %p748_p4, %p747_p7 }
  0x90   : > { %p745_p5 = pneg %p744_p2 }
  0x91   : > { %p751_p8 = por %p750_p0, %p749_p3 }
  0x93   : > { %p752_p9 = pnand %p751_p8, %p745_p5 }
  0x95   : > { %755 = shalt.err (!%p752_p9)
}
  0x96   : > { %s822_s11 = smov 128   ;;  %s823_s19 = smov 8  }
  0x97   : > { %567 = dma.vmem_to_hbm [thread:$0]  (%p1194_p10), %s1113_s20, 1024, %s1111_s30, %s394_s6, %s822_s11, %s822_s11, %s823_s19  }
  0x98 PF: > { %s422_s9 = sand.u32 1, %s794_s12   ;;  %p1195_p12 = scmp.ne.s32.totalorder %s1182_s27, 0 }
  0x99   : > { %p1196_p1 = scmp.ge.s32.totalorder %s814_s17, 2  ;;  %s423_s18 = scalar_lea.sflag [#allocation4], %s422_s9 }
  0x9b   : > { %p580_p6 = pnand %p1196_p1, %p1195_p12 }
  0x9d   : > { %789 = dma.done.wait (!%p580_p6), %s423_s18, 1024  }
  0x9e   : > { %791 = vsyncadd (!%p580_p6), %s423_s18, 4294966272  ;;  %s22_s17 = sadd.s32 1, %s814_s17   ;;  %s1197_s24 = sld [smem:[#allocation14_spill]] }
  0x9f   : > { %p19_p13 = scmp.ge.s32.totalorder %s22_s17, 4   ;;  %s1198_s15 = sld [smem:[#allocation12_spill]] }
  0xa0   : > { %s1199_s16 = sld [smem:[#allocation13_spill]]  ;;  %s1200_s12 = smov %s798_s13 }
  0xa1   : > { %s1201_s13 = smov %s802_s14  ;;  %21 = sbr.rel (!%p19_p13) target bundleno = 10 (0xa), region = 105 }
  0xa4   : > { %s1202_s14 = smov %s1197_s24 }
  0xa8   :  { %428 = vsyncpa [#allocation3], 1 }
  0xa9   :  { %430 = vsyncpa [#allocation3 + $0x1], 1 }
  0xaa   :  { %431 = vsyncpa [#allocation6], 1 }
  0xab   :  { %433 = vsyncpa [#allocation6 + $0x1], 1 }
  0xac   :  { %434 = vsyncpa [#allocation4], 1 }
  0xad   :  { %436 = vsyncpa [#allocation4 + $0x1], 1 }

</bundles_post_ra>
